<compile_context>
chip_gen: v6e
topology: v6e:2x2x1
jax: 0.10.0
libtpu: 0.0.40
codegen_flags: <defaults>
</compile_context>

<pallas_src>
import functools
import math

import jax
import jax.numpy as jnp
from jax.experimental import pallas as pl
from jax.experimental.pallas import tpu as pltpu

LN_EPS = 1e-5
WEIGHT_DTYPE = jnp.bfloat16          # matmul-input dtype (native MXU path)
VMEM_LIMIT = 48 * 1024 * 1024        # raise above the default scoped limit; < v7x physical


def _layernorm(x, g, b):
    x = x.astype(jnp.float32)
    mu = jnp.mean(x, axis=-1, keepdims=True)
    var = jnp.mean(jnp.square(x - mu), axis=-1, keepdims=True)
    return (x - mu) * jax.lax.rsqrt(var + LN_EPS) * g.astype(jnp.float32) + b.astype(jnp.float32)


# ---------------------------------------------------------------------------
# Prologue kernel: LN(vis), LN(aud), concat with OFF / MOD tokens  ->  x (B, S, D)
# (replaces two standalone LayerNorm pallas_calls + an XLA concat)
# ---------------------------------------------------------------------------
def prologue_kernel(vis_ref, aud_ref, off_ref, mod_ref,
                    gv_ref, bv_ref, ga_ref, ba_ref, o_ref):
    sv = vis_ref.shape[0]
    sa = aud_ref.shape[0]
    dt = o_ref.dtype
    vis_ln = _layernorm(vis_ref[...], gv_ref[...], bv_ref[...])
    aud_ln = _layernorm(aud_ref[...], ga_ref[...], ba_ref[...])
    o_ref[0:1, :] = off_ref[...].astype(dt)
    o_ref[1:1 + sv, :] = vis_ln.astype(dt)
    o_ref[1 + sv:2 + sv, :] = mod_ref[...].astype(dt)
    o_ref[2 + sv:2 + sv + sa, :] = aud_ln.astype(dt)


def prologue_pallas(vis, aud, off_tok, mod_tok, gv, bv, ga, ba):
    B, Sv, D = vis.shape
    _, Sa, _ = aud.shape
    S = 2 + Sv + Sa
    return pl.pallas_call(
        prologue_kernel,
        out_shape=jax.ShapeDtypeStruct((B, S, D), vis.dtype),
        grid=(B,),
        in_specs=[
            pl.BlockSpec((None, Sv, D), lambda i: (i, 0, 0)),
            pl.BlockSpec((None, Sa, D), lambda i: (i, 0, 0)),
            pl.BlockSpec((None, 1, D), lambda i: (0, 0, 0)),
            pl.BlockSpec((None, 1, D), lambda i: (0, 0, 0)),
            pl.BlockSpec((1, D), lambda i: (0, 0)),
            pl.BlockSpec((1, D), lambda i: (0, 0)),
            pl.BlockSpec((1, D), lambda i: (0, 0)),
            pl.BlockSpec((1, D), lambda i: (0, 0)),
        ],
        out_specs=pl.BlockSpec((None, S, D), lambda i: (i, 0, 0)),
        compiler_params=pltpu.CompilerParams(
            dimension_semantics=("parallel",),
            vmem_limit_bytes=VMEM_LIMIT),
    )(vis, aud, off_tok, mod_tok, gv, bv, ga, ba)


# ---------------------------------------------------------------------------
# Fused transformer Block kernel: pre-LN MHSA + residual, pre-LN MLP + residual,
# optional fused final LayerNorm (ln_f) on the last layer.
# ---------------------------------------------------------------------------
def block_kernel(x_ref, ln1g_ref, ln1b_ref, wqkv_ref, bqkv_ref, wo_ref, bo_ref,
                 ln2g_ref, ln2b_ref, w1_ref, b1_ref, w2_ref, b2_ref,
                 lnfg_ref, lnfb_ref, o_ref,
                 qh_sc, kh_sc, vh_sc, attn_sc,
                 *, n_head, apply_final_ln):
    x = x_ref[...].astype(jnp.float32)            # (S, D) residual stream in f32
    S, D = x.shape
    dh = D // n_head
    scale = 1.0 / math.sqrt(dh)

    # ---- multi-head self-attention (pre-LN, non-causal) ----
    h = _layernorm(x, ln1g_ref[...], ln1b_ref[...]).astype(wqkv_ref.dtype)
    # fused QKV projection: one (S, D) x (D, 3D) bf16 MXU matmul, f32 accumulation
    qkv = jnp.dot(h, wqkv_ref[...], preferred_element_type=jnp.float32)
    qkv = qkv + bqkv_ref[...].astype(jnp.float32)             # (S, 3D) f32

    # split heads into (H, S, dh) through VMEM scratch (static lane slices, no
    # in-register lane-splitting reshapes)
    for hh in range(n_head):
        qh_sc[hh] = qkv[:, 0 * D + hh * dh:0 * D + (hh + 1) * dh].astype(qh_sc.dtype)
        kh_sc[hh] = qkv[:, 1 * D + hh * dh:1 * D + (hh + 1) * dh].astype(kh_sc.dtype)
        vh_sc[hh] = qkv[:, 2 * D + hh * dh:2 * D + (hh + 1) * dh].astype(vh_sc.dtype)
    qh, kh, vh = qh_sc[...], kh_sc[...], vh_sc[...]           # (H, S, dh) bf16

    # head-batched attention: QK^T, softmax (EUP reciprocal), PV
    s = jnp.einsum("hqd,hkd->hqk", qh, kh,
                   preferred_element_type=jnp.float32) * scale
    s = s - jnp.max(s, axis=-1, keepdims=True)
    p = jnp.exp(s)
    p = p * pl.reciprocal(jnp.sum(p, axis=-1, keepdims=True), approx=True)
    oh = jnp.einsum("hqk,hkd->hqd", p.astype(vh.dtype), vh,
                    preferred_element_type=jnp.float32)       # (H, S, dh) f32

    # merge heads back to (S, D), then ONE full-depth output projection
    for hh in range(n_head):
        attn_sc[:, hh * dh:(hh + 1) * dh] = oh[hh].astype(attn_sc.dtype)
    y = jnp.dot(attn_sc[...], wo_ref[...], preferred_element_type=jnp.float32)
    x = x + y + bo_ref[...].astype(jnp.float32)

    # ---- MLP (pre-LN, 4x, NewGELU/tanh approximation as in minGPT Blocks) ----
    h2 = _layernorm(x, ln2g_ref[...], ln2b_ref[...]).astype(w1_ref.dtype)
    m = jnp.dot(h2, w1_ref[...], preferred_element_type=jnp.float32)
    m = m + b1_ref[...].astype(jnp.float32)
    m = jax.nn.gelu(m, approximate=True)
    y2 = jnp.dot(m.astype(w2_ref.dtype), w2_ref[...], preferred_element_type=jnp.float32)
    x = x + y2 + b2_ref[...].astype(jnp.float32)

    if apply_final_ln:                            # ln_f fused into the last block
        x = _layernorm(x, lnfg_ref[...], lnfb_ref[...])

    o_ref[...] = x.astype(o_ref.dtype)


def block_pallas(x, lp, lnf_g, lnf_b, n_head, apply_final_ln):
    B, S, D = x.shape
    F = lp["w1"].shape[1]
    dh = D // n_head

    def rep(shape):
        return pl.BlockSpec(shape, lambda i: (0,) * len(shape))

    in_specs = [
        pl.BlockSpec((None, S, D), lambda i: (i, 0, 0)),
        rep((1, D)), rep((1, D)),                 # ln1 gamma / beta
        rep((D, 3 * D)), rep((1, 3 * D)),         # fused wqkv, bqkv
        rep((D, D)), rep((1, D)),                 # wo, bo
        rep((1, D)), rep((1, D)),                 # ln2 gamma / beta
        rep((D, F)), rep((1, F)),                 # mlp w1, b1
        rep((F, D)), rep((1, D)),                 # mlp w2, b2
        rep((1, D)), rep((1, D)),                 # ln_f gamma / beta (used on last layer)
    ]
    kernel = functools.partial(block_kernel, n_head=n_head,
                               apply_final_ln=apply_final_ln)
    return pl.pallas_call(
        kernel,
        out_shape=jax.ShapeDtypeStruct((B, S, D), x.dtype),
        grid=(B,),
        in_specs=in_specs,
        out_specs=pl.BlockSpec((None, S, D), lambda i: (i, 0, 0)),
        scratch_shapes=[
            pltpu.VMEM((n_head, S, dh), WEIGHT_DTYPE),   # q heads
            pltpu.VMEM((n_head, S, dh), WEIGHT_DTYPE),   # k heads
            pltpu.VMEM((n_head, S, dh), WEIGHT_DTYPE),   # v heads
            pltpu.VMEM((S, D), WEIGHT_DTYPE),            # merged attention output
        ],
        compiler_params=pltpu.CompilerParams(
            dimension_semantics=("parallel",),
            vmem_limit_bytes=VMEM_LIMIT),
    )(x, lp["ln1_g"], lp["ln1_b"], lp["wqkv"], lp["bqkv"], lp["wo"], lp["bo"],
      lp["ln2_g"], lp["ln2_b"], lp["w1"], lp["b1"], lp["w2"], lp["b2"],
      lnf_g, lnf_b)


# ---------------------------------------------------------------------------
# Parameters (deterministic synthetic init, mirroring init_weights)
# ---------------------------------------------------------------------------
def make_params(key, n_layer, n_head, n_embd):
    D = n_embd
    F = 4 * D
    keys = iter(jax.random.split(key, 2 + 6 * n_layer))

    def lin(k, fin, fout):
        # nn.Linear: weight ~ N(0, 0.02), bias = 0  (stored as (in, out))
        return (0.02 * jax.random.normal(k, (fin, fout), jnp.float32),
                jnp.zeros((1, fout), jnp.float32))

    ones = lambda: jnp.ones((1, D), jnp.float32)
    zeros = lambda: jnp.zeros((1, D), jnp.float32)

    params = {
        "OFF_tok": jax.random.normal(next(keys), (1, 1, D), jnp.float32),
        "MOD_tok": jax.random.normal(next(keys), (1, 1, D), jnp.float32),
        "ln_vis_g": ones(), "ln_vis_b": zeros(),
        "ln_aud_g": ones(), "ln_aud_b": zeros(),
        "ln_f_g": ones(), "ln_f_b": zeros(),
        "blocks": [],
    }
    for _ in range(n_layer):
        wq, bq = lin(next(keys), D, D)
        wk, bk = lin(next(keys), D, D)
        wv, bv = lin(next(keys), D, D)
        wo, bo = lin(next(keys), D, D)
        w1, b1 = lin(next(keys), D, F)
        w2, b2 = lin(next(keys), F, D)
        wqkv = jnp.concatenate([wq, wk, wv], axis=1).astype(WEIGHT_DTYPE)
        bqkv = jnp.concatenate([bq, bk, bv], axis=1)
        params["blocks"].append(dict(
            ln1_g=ones(), ln1_b=zeros(), ln2_g=ones(), ln2_b=zeros(),
            wqkv=wqkv, bqkv=bqkv,
            wo=wo.astype(WEIGHT_DTYPE), bo=bo,
            w1=w1.astype(WEIGHT_DTYPE), b1=b1,
            w2=w2.astype(WEIGHT_DTYPE), b2=b2))
    return params


# ---------------------------------------------------------------------------
# Forward pass (prologue kernel + one fused block kernel per layer)
# ---------------------------------------------------------------------------
def global_transformer_forward(vis, aud, params, n_head):
    # TODO(synk): tok_drop_vis / tok_drop_aud (Dropout2d), embedding drop and the blocks'
    # attn/resid dropout are identities in eval mode; training-mode dropout not implemented.
    assert len(params["blocks"]) >= 1, "need at least one Block (ln_f is fused into it)"
    x = prologue_pallas(vis, aud, params["OFF_tok"], params["MOD_tok"],
                        params["ln_vis_g"], params["ln_vis_b"],
                        params["ln_aud_g"], params["ln_aud_b"])
    n_layer = len(params["blocks"])
    for li, lp in enumerate(params["blocks"]):
        x = block_pallas(x, lp, params["ln_f_g"], params["ln_f_b"], n_head,
                         apply_final_ln=(li == n_layer - 1))
    return x


# ---------------------------------------------------------------------------
# Pure-JAX reference (same bf16-input / f32-accumulate numerics, exact softmax)
# ---------------------------------------------------------------------------
def reference_forward(vis, aud, params, n_head):
    B, Sv, D = vis.shape
    _, Sa, _ = aud.shape
    dh = D // n_head
    bf16 = jnp.bfloat16

    def ln(x, g, b):
        mu = jnp.mean(x, axis=-1, keepdims=True)
        var = jnp.mean(jnp.square(x - mu), axis=-1, keepdims=True)
        return (x - mu) * jax.lax.rsqrt(var + LN_EPS) * g + b

    def mm(a, w):
        return jnp.dot(a.astype(bf16), w.astype(bf16),
                       preferred_element_type=jnp.float32)

    vis_ln = ln(vis, params["ln_vis_g"], params["ln_vis_b"])
    aud_ln = ln(aud, params["ln_aud_g"], params["ln_aud_b"])
    off = jnp.broadcast_to(params["OFF_tok"], (B, 1, D))
    mod = jnp.broadcast_to(params["MOD_tok"], (B, 1, D))
    x = jnp.concatenate([off, vis_ln, mod, aud_ln], axis=1)
    S = x.shape[1]
    for lp in params["blocks"]:
        h = ln(x, lp["ln1_g"], lp["ln1_b"])
        qkv = mm(h, lp["wqkv"]) + lp["bqkv"]
        q, k, v = qkv[..., :D], qkv[..., D:2 * D], qkv[..., 2 * D:]
        q = q.reshape(B, S, n_head, dh).transpose(0, 2, 1, 3)
        k = k.reshape(B, S, n_head, dh).transpose(0, 2, 1, 3)
        v = v.reshape(B, S, n_head, dh).transpose(0, 2, 1, 3)
        att = jnp.einsum("bhqd,bhkd->bhqk", q.astype(bf16), k.astype(bf16),
                         preferred_element_type=jnp.float32) / math.sqrt(dh)
        att = jax.nn.softmax(att, axis=-1)
        o = jnp.einsum("bhqk,bhkd->bhqd", att.astype(bf16), v.astype(bf16),
                       preferred_element_type=jnp.float32)
        o = o.transpose(0, 2, 1, 3).reshape(B, S, D)
        x = x + mm(o, lp["wo"]) + lp["bo"]
        h2 = ln(x, lp["ln2_g"], lp["ln2_b"])
        m = jax.nn.gelu(mm(h2, lp["w1"]) + lp["b1"], approximate=True)
        x = x + mm(m, lp["w2"]) + lp["b2"]
    return ln(x, params["ln_f_g"], params["ln_f_b"])


if __name__ == "__main__":
    B, Sv, Sa, D = 2, 8, 8, 32
    n_layer, n_head = 2, 4

    key = jax.random.PRNGKey(0)
    kp, kv, ka = jax.random.split(key, 3)
    params = make_params(kp, n_layer, n_head, D)
    vis = jax.random.normal(kv, (B, Sv, D), jnp.float32)
    aud = jax.random.normal(ka, (B, Sa, D), jnp.float32)

    out = jax.block_until_ready(global_transformer_forward(vis, aud, params, n_head))
    assert out.shape == (B, 1 + Sv + 1 + Sa, D), out.shape

    ref = jax.block_until_ready(reference_forward(vis, aud, params, n_head))
    max_err = float(jnp.max(jnp.abs(out - ref)))
    if not jnp.allclose(out, ref, atol=2e-2, rtol=2e-2):
        raise AssertionError(f"mismatch vs reference: max abs err = {max_err}")

    print("KERNEL_OK")
</pallas_src>

<mosaic_0001>
module attributes {stable_mosaic.version = 11 : i64} {
  func.func @prologue_kernel(%arg0: i32, %arg1: memref<1x8x32xf32, #tpu.memory_space<vmem>>, %arg2: memref<1x8x32xf32, #tpu.memory_space<vmem>>, %arg3: memref<1x1x32xf32, #tpu.memory_space<vmem>>, %arg4: memref<1x1x32xf32, #tpu.memory_space<vmem>>, %arg5: memref<1x32xf32, #tpu.memory_space<vmem>>, %arg6: memref<1x32xf32, #tpu.memory_space<vmem>>, %arg7: memref<1x32xf32, #tpu.memory_space<vmem>>, %arg8: memref<1x32xf32, #tpu.memory_space<vmem>>, %arg9: memref<1x18x32xf32, #tpu.memory_space<vmem>>) attributes {dimension_semantics = [#tpu.dimension_semantics<parallel>], iteration_bounds = array<i64: 2>, scalar_prefetch = 0 : i64, scratch_operands = 0 : i64, tpu.core_type = #tpu.core_type<tc>, window_params = [{transform_indices = @transform_0, window_bounds = array<i64: 1, 8, 32>}, {transform_indices = @transform_1, window_bounds = array<i64: 1, 8, 32>}, {pipeline_mode = #tpu.pipeline_mode<synchronous>, transform_indices = @transform_2, window_bounds = array<i64: 1, 1, 32>}, {pipeline_mode = #tpu.pipeline_mode<synchronous>, transform_indices = @transform_3, window_bounds = array<i64: 1, 1, 32>}, {pipeline_mode = #tpu.pipeline_mode<synchronous>, transform_indices = @transform_4, window_bounds = array<i64: 1, 32>}, {pipeline_mode = #tpu.pipeline_mode<synchronous>, transform_indices = @transform_5, window_bounds = array<i64: 1, 32>}, {pipeline_mode = #tpu.pipeline_mode<synchronous>, transform_indices = @transform_6, window_bounds = array<i64: 1, 32>}, {pipeline_mode = #tpu.pipeline_mode<synchronous>, transform_indices = @transform_7, window_bounds = array<i64: 1, 32>}, {transform_indices = @transform_8, window_bounds = array<i64: 1, 18, 32>}]} {
    %c0 = arith.constant 0 : index
    %c0_0 = arith.constant 0 : index
    %c0_1 = arith.constant 0 : index
    %0 = vector.load %arg1[%c0, %c0_0, %c0_1] : memref<1x8x32xf32, #tpu.memory_space<vmem>>, vector<1x8x32xf32>
    %1 = vector.shape_cast %0 : vector<1x8x32xf32> to vector<8x32xf32>
    %c0_2 = arith.constant 0 : index
    %c0_3 = arith.constant 0 : index
    %2 = vector.load %arg5[%c0_2, %c0_3] : memref<1x32xf32, #tpu.memory_space<vmem>>, vector<1x32xf32>
    %c0_4 = arith.constant 0 : index
    %c0_5 = arith.constant 0 : index
    %3 = vector.load %arg6[%c0_4, %c0_5] : memref<1x32xf32, #tpu.memory_space<vmem>>, vector<1x32xf32>
    %cst = arith.constant dense<0.000000e+00> : vector<8xf32>
    %4 = vector.multi_reduction <add>, %1, %cst [1] : vector<8x32xf32> to vector<8xf32>
    %5 = vector.shape_cast %4 : vector<8xf32> to vector<8x1xf32>
    %cst_6 = arith.constant 3.200000e+01 : f32
    %6 = vector.broadcast %cst_6 : f32 to vector<8x1xf32>
    %7 = arith.divf %5, %6 : vector<8x1xf32>
    %8 = vector.broadcast %7 : vector<8x1xf32> to vector<8x32xf32>
    %9 = arith.subf %1, %8 : vector<8x32xf32>
    %10 = arith.mulf %9, %9 : vector<8x32xf32>
    %cst_7 = arith.constant dense<0.000000e+00> : vector<8xf32>
    %11 = vector.multi_reduction <add>, %10, %cst_7 [1] : vector<8x32xf32> to vector<8xf32>
    %12 = vector.shape_cast %11 : vector<8xf32> to vector<8x1xf32>
    %cst_8 = arith.constant 3.200000e+01 : f32
    %13 = vector.broadcast %cst_8 : f32 to vector<8x1xf32>
    %14 = arith.divf %12, %13 : vector<8x1xf32>
    %15 = vector.broadcast %7 : vector<8x1xf32> to vector<8x32xf32>
    %16 = arith.subf %1, %15 : vector<8x32xf32>
    %cst_9 = arith.constant 9.99999974E-6 : f32
    %17 = vector.broadcast %cst_9 : f32 to vector<8x1xf32>
    %18 = arith.addf %14, %17 : vector<8x1xf32>
    %19 = math.rsqrt %18 : vector<8x1xf32>
    %20 = vector.broadcast %19 : vector<8x1xf32> to vector<8x32xf32>
    %21 = arith.mulf %16, %20 : vector<8x32xf32>
    %22 = vector.broadcast %2 : vector<1x32xf32> to vector<8x32xf32>
    %23 = arith.mulf %21, %22 : vector<8x32xf32>
    %24 = vector.broadcast %3 : vector<1x32xf32> to vector<8x32xf32>
    %25 = arith.addf %23, %24 : vector<8x32xf32>
    %c0_10 = arith.constant 0 : index
    %c0_11 = arith.constant 0 : index
    %c0_12 = arith.constant 0 : index
    %26 = vector.load %arg2[%c0_10, %c0_11, %c0_12] : memref<1x8x32xf32, #tpu.memory_space<vmem>>, vector<1x8x32xf32>
    %27 = vector.shape_cast %26 : vector<1x8x32xf32> to vector<8x32xf32>
    %c0_13 = arith.constant 0 : index
    %c0_14 = arith.constant 0 : index
    %28 = vector.load %arg7[%c0_13, %c0_14] : memref<1x32xf32, #tpu.memory_space<vmem>>, vector<1x32xf32>
    %c0_15 = arith.constant 0 : index
    %c0_16 = arith.constant 0 : index
    %29 = vector.load %arg8[%c0_15, %c0_16] : memref<1x32xf32, #tpu.memory_space<vmem>>, vector<1x32xf32>
    %cst_17 = arith.constant dense<0.000000e+00> : vector<8xf32>
    %30 = vector.multi_reduction <add>, %27, %cst_17 [1] : vector<8x32xf32> to vector<8xf32>
    %31 = vector.shape_cast %30 : vector<8xf32> to vector<8x1xf32>
    %cst_18 = arith.constant 3.200000e+01 : f32
    %32 = vector.broadcast %cst_18 : f32 to vector<8x1xf32>
    %33 = arith.divf %31, %32 : vector<8x1xf32>
    %34 = vector.broadcast %33 : vector<8x1xf32> to vector<8x32xf32>
    %35 = arith.subf %27, %34 : vector<8x32xf32>
    %36 = arith.mulf %35, %35 : vector<8x32xf32>
    %cst_19 = arith.constant dense<0.000000e+00> : vector<8xf32>
    %37 = vector.multi_reduction <add>, %36, %cst_19 [1] : vector<8x32xf32> to vector<8xf32>
    %38 = vector.shape_cast %37 : vector<8xf32> to vector<8x1xf32>
    %cst_20 = arith.constant 3.200000e+01 : f32
    %39 = vector.broadcast %cst_20 : f32 to vector<8x1xf32>
    %40 = arith.divf %38, %39 : vector<8x1xf32>
    %41 = vector.broadcast %33 : vector<8x1xf32> to vector<8x32xf32>
    %42 = arith.subf %27, %41 : vector<8x32xf32>
    %cst_21 = arith.constant 9.99999974E-6 : f32
    %43 = vector.broadcast %cst_21 : f32 to vector<8x1xf32>
    %44 = arith.addf %40, %43 : vector<8x1xf32>
    %45 = math.rsqrt %44 : vector<8x1xf32>
    %46 = vector.broadcast %45 : vector<8x1xf32> to vector<8x32xf32>
    %47 = arith.mulf %42, %46 : vector<8x32xf32>
    %48 = vector.broadcast %28 : vector<1x32xf32> to vector<8x32xf32>
    %49 = arith.mulf %47, %48 : vector<8x32xf32>
    %50 = vector.broadcast %29 : vector<1x32xf32> to vector<8x32xf32>
    %51 = arith.addf %49, %50 : vector<8x32xf32>
    %c0_22 = arith.constant 0 : index
    %c0_23 = arith.constant 0 : index
    %c0_24 = arith.constant 0 : index
    %52 = vector.load %arg3[%c0_22, %c0_23, %c0_24] : memref<1x1x32xf32, #tpu.memory_space<vmem>>, vector<1x1x32xf32>
    %53 = vector.shape_cast %52 : vector<1x1x32xf32> to vector<1x32xf32>
    %c0_25 = arith.constant 0 : index
    %c0_26 = arith.constant 0 : index
    %c0_27 = arith.constant 0 : index
    %54 = vector.load %arg9[%c0_25, %c0_26, %c0_27] : memref<1x18x32xf32, #tpu.memory_space<vmem>>, vector<1x1x32xf32>
    %55 = vector.shape_cast %54 : vector<1x1x32xf32> to vector<1x32xf32>
    %56 = vector.shape_cast %53 : vector<1x32xf32> to vector<1x1x32xf32>
    tpu.vector_store %arg9[%c0_25, %c0_26, %c0_27], %56 {strides = array<i32>} : memref<1x18x32xf32, #tpu.memory_space<vmem>>, vector<1x1x32xf32>,
    %c0_28 = arith.constant 0 : index
    %c1 = arith.constant 1 : index
    %c0_29 = arith.constant 0 : index
    %57 = vector.load %arg9[%c0_28, %c1, %c0_29] : memref<1x18x32xf32, #tpu.memory_space<vmem>>, vector<1x8x32xf32>
    %58 = vector.shape_cast %57 : vector<1x8x32xf32> to vector<8x32xf32>
    %59 = vector.shape_cast %25 : vector<8x32xf32> to vector<1x8x32xf32>
    tpu.vector_store %arg9[%c0_28, %c1, %c0_29], %59 {strides = array<i32>} : memref<1x18x32xf32, #tpu.memory_space<vmem>>, vector<1x8x32xf32>,
    %c0_30 = arith.constant 0 : index
    %c0_31 = arith.constant 0 : index
    %c0_32 = arith.constant 0 : index
    %60 = vector.load %arg4[%c0_30, %c0_31, %c0_32] : memref<1x1x32xf32, #tpu.memory_space<vmem>>, vector<1x1x32xf32>
    %61 = vector.shape_cast %60 : vector<1x1x32xf32> to vector<1x32xf32>
    %c0_33 = arith.constant 0 : index
    %c9 = arith.constant 9 : index
    %c0_34 = arith.constant 0 : index
    %62 = vector.load %arg9[%c0_33, %c9, %c0_34] : memref<1x18x32xf32, #tpu.memory_space<vmem>>, vector<1x1x32xf32>
    %63 = vector.shape_cast %62 : vector<1x1x32xf32> to vector<1x32xf32>
    %64 = vector.shape_cast %61 : vector<1x32xf32> to vector<1x1x32xf32>
    tpu.vector_store %arg9[%c0_33, %c9, %c0_34], %64 {strides = array<i32>} : memref<1x18x32xf32, #tpu.memory_space<vmem>>, vector<1x1x32xf32>,
    %c0_35 = arith.constant 0 : index
    %c10 = arith.constant 10 : index
    %c0_36 = arith.constant 0 : index
    %65 = vector.load %arg9[%c0_35, %c10, %c0_36] : memref<1x18x32xf32, #tpu.memory_space<vmem>>, vector<1x8x32xf32>
    %66 = vector.shape_cast %65 : vector<1x8x32xf32> to vector<8x32xf32>
    %67 = vector.shape_cast %51 : vector<8x32xf32> to vector<1x8x32xf32>
    tpu.vector_store %arg9[%c0_35, %c10, %c0_36], %67 {strides = array<i32>} : memref<1x18x32xf32, #tpu.memory_space<vmem>>, vector<1x8x32xf32>,
    return
  }
  func.func @transform_0(%arg0: i32) -> (i32, i32, i32) {
    %c0_i32 = arith.constant 0 : i32
    %c0_i32_0 = arith.constant 0 : i32
    %c0_i32_1 = arith.constant 0 : i32
    return %arg0, %c0_i32, %c0_i32_0 : i32, i32, i32
  }
  func.func @transform_1(%arg0: i32) -> (i32, i32, i32) {
    %c0_i32 = arith.constant 0 : i32
    %c0_i32_0 = arith.constant 0 : i32
    %c0_i32_1 = arith.constant 0 : i32
    return %arg0, %c0_i32, %c0_i32_0 : i32, i32, i32
  }
  func.func @transform_2(%arg0: i32) -> (i32, i32, i32) {
    %c0_i32 = arith.constant 0 : i32
    %c0_i32_0 = arith.constant 0 : i32
    %c0_i32_1 = arith.constant 0 : i32
    %c0_i32_2 = arith.constant 0 : i32
    return %c0_i32, %c0_i32_0, %c0_i32_1 : i32, i32, i32
  }
  func.func @transform_3(%arg0: i32) -> (i32, i32, i32) {
    %c0_i32 = arith.constant 0 : i32
    %c0_i32_0 = arith.constant 0 : i32
    %c0_i32_1 = arith.constant 0 : i32
    %c0_i32_2 = arith.constant 0 : i32
    return %c0_i32, %c0_i32_0, %c0_i32_1 : i32, i32, i32
  }
  func.func @transform_4(%arg0: i32) -> (i32, i32) {
    %c0_i32 = arith.constant 0 : i32
    %c0_i32_0 = arith.constant 0 : i32
    %c0_i32_1 = arith.constant 0 : i32
    return %c0_i32, %c0_i32_0 : i32, i32
  }
  func.func @transform_5(%arg0: i32) -> (i32, i32) {
    %c0_i32 = arith.constant 0 : i32
    %c0_i32_0 = arith.constant 0 : i32
    %c0_i32_1 = arith.constant 0 : i32
    return %c0_i32, %c0_i32_0 : i32, i32
  }
  func.func @transform_6(%arg0: i32) -> (i32, i32) {
    %c0_i32 = arith.constant 0 : i32
    %c0_i32_0 = arith.constant 0 : i32
    %c0_i32_1 = arith.constant 0 : i32
    return %c0_i32, %c0_i32_0 : i32, i32
  }
  func.func @transform_7(%arg0: i32) -> (i32, i32) {
    %c0_i32 = arith.constant 0 : i32
    %c0_i32_0 = arith.constant 0 : i32
    %c0_i32_1 = arith.constant 0 : i32
    return %c0_i32, %c0_i32_0 : i32, i32
  }
  func.func @transform_8(%arg0: i32) -> (i32, i32, i32) {
    %c0_i32 = arith.constant 0 : i32
    %c0_i32_0 = arith.constant 0 : i32
    %c0_i32_1 = arith.constant 0 : i32
    return %arg0, %c0_i32, %c0_i32_0 : i32, i32, i32
  }
}

</mosaic_0001>

<bundles_post_ra>
// kernel: tpu_custom_call.1
= control target key start
LH: loop header
LB: loop body
LE: loop exit
PB: predicated region body
PF: predicated region fallthrough
CT: control target
= control target key end

     0   :  { %13 = vsyncpa [#allocation3], 0  ;;  %s910_s0 = inlined_call_operand.hbm [shape: f32[2,8,32], index: 0, kind: input, shape index: {}]   ;;  %s911_s1 = inlined_call_operand.hbm [shape: f32[2,8,32], index: 1, kind: input, shape index: {}]   ;;  %s912_s2 = inlined_call_operand.vmem [shape: f32[1,1,32], index: 2, kind: input, shape index: {}]   ;;  %s913_s3 = inlined_call_operand.vmem [shape: f32[1,1,32], index: 3, kind: input, shape index: {}]   ;;  %s914_s4 = inlined_call_operand.vmem [shape: f32[1,32], index: 4, kind: input, shape index: {}]   ;;  %s915_s5 = inlined_call_operand.vmem [shape: f32[1,32], index: 5, kind: input, shape index: {}]   ;;  %s916_s6 = inlined_call_operand.vmem [shape: f32[1,32], index: 6, kind: input, shape index: {}]   ;;  %s917_s7 = inlined_call_operand.vmem [shape: f32[1,32], index: 7, kind: input, shape index: {}]   ;;  %s918_s8 = inlined_call_operand.vmem [shape: f32[2,18,32], index: 8, kind: output, shape index: {}]  }
   0x1   :  { %15 = vsyncpa [#allocation3 + $0x1], 0 }
   0x2   :  { %16 = vsyncpa [#allocation5], 0 }
   0x3   :  { %18 = vsyncpa [#allocation5 + $0x1], 0  ;;  %s728_s27 = smov 0   ;;  %s730_s28 = smov 0  }
   0x4   :  { %s732_s29 = smov 0   ;;  %s734_s30 = smov 0  }
   0x5 LB: > { %s747_s9 = sadd.s32 4294967295, %s679_s30   ;;  %s750_s10 = sadd.s32 1, %s679_s30   ;;  %s679_s30 = sphi %s734_s30, %s930_s30   ;;  %s675_s29 = sphi %s732_s29, %s929_s29   ;;  %s671_s28 = sphi %s730_s28, %s928_s28   ;;  %s667_s27 = sphi %s728_s27, %s927_s27  }
   0x6   : > { %s28_s11 = ssub.s32 %s679_s30, %s750_s10  ;;  %s31_s12 = sadd.s32 1, %s675_s29 }
   0x7   : > { %p29_p0 = scmp.eq.s32.totalorder %s28_s11, 0  ;;  %p38_p1 = scmp.ne.s32.totalorder %s675_s29, %s671_s28 }
   0x8   : > { %p39_p2 = scmp.eq.s32.totalorder %s679_s30, 0  ;;  %p44_p3 = scmp.ne.s32.totalorder %s671_s28, %s667_s27 }
   0x9   : > { %s760_s13 = scalar_select %p29_p0, %s675_s29, %s31_s12  }
   0xa   : > { %p40_p4 = por %p39_p2, %p38_p1  ;;  %p45_p5 = scmp.eq.s32.totalorder %s747_s9, 0 }
   0xb   : > { %p548_p6 = scmp.lt.s32.totalorder %s679_s30, 2  ;;  %s769_s15 = sand.u32 1, %s675_s29  }
   0xc   : > { %p764_p7 = por %p45_p5, %p44_p3  ;;  %s522_s16 = sshll.u32 %s769_s15, 3 }
   0xd   : > { %s523_s17 = sshll.u32 %s679_s30, 7  ;;  %s268_s21 = scalar_lea.vmem [#allocation2], %s522_s16 }
   0xe   : > { %s920_s14 = scalar_select %p764_p7, 1, 0 }
   0xf   : > { %s778_s20 = scalar_lea.hbm %s910_s0, %s523_s17  ;;  %s275_s22 = sshll.u32 %s268_s21, 4  ;;  %s782_s22 = int_to_ptr.vmem [resolvable:$true] %s275_s22 }
  0x10   : > { %p784_p8 = pnand %p548_p6, %p40_p4  ;;  %s265_s24 = scalar_lea.sflag [#allocation3], %s769_s15 }
  0x11   : > { %s585_s25 = scalar_lea.hbm %s778_s20, 128  ;;  %s590_s11 = scalar_lea.hbm %s910_s0, 256 }
  0x12   : > { %p586_p11 = scmp.ne.s32.totalorder %s778_s20, %s585_s25  ;;  %p587_p12 = pneg %p784_p8 }
  0x13   : > { %p591_p1 = scmp.lt.s32.totalorder %s778_s20, %s910_s0  ;;  %p592_p2 = scmp.lt.s32.totalorder %s590_s11, %s585_s25 }
  0x14   : > { %p588_p13 = pnand %p587_p12, %p586_p11 }
  0x15   : > { %p593_p3 = por %p592_p2, %p591_p1 }
  0x16   : > { %p589_p0 = pneg %p588_p13 }
  0x18   : > { %p594_p4 = pnand %p593_p3, %p589_p0 }
  0x1a   : > { %597 = shalt.err (!%p594_p4)
}
  0x1b   : > { %s598_s19 = scalar_lea.vmem %s782_s22, 128  ;;  %s681_s21 = smov [#allocation2]  }
  0x1c   : > { %p599_p5 = scmp.ne.s32.totalorder %s782_s22, %s598_s19  ;;  %s603_s26 = sshll.u32 %s681_s21, 4  ;;  %s604_s26 = int_to_ptr.vmem [resolvable:$false] %s603_s26 }
  0x1d   : > { %s605_s27 = scalar_lea.vmem %s604_s26, 256  ;;  %p606_p13 = scmp.lt.s32.totalorder %s782_s22, %s604_s26 }
  0x1e   : > { %p601_p6 = pnand %p599_p5, %p587_p12  ;;  %p607_p9 = scmp.lt.s32.totalorder %s605_s27, %s598_s19 }
  0x20   : > { %p602_p11 = pneg %p601_p6  ;;  %p608_p10 = por %p607_p9, %p606_p13 }
  0x22   : > { %p609_p1 = pnand %p608_p10, %p602_p11 }
  0x24   : > { %612 = shalt.err (!%p609_p1)
}
  0x25   : > { %544 = dma.hbm_to_vmem [thread:$0]  (!%p784_p8), %s778_s20, 128, %s782_s22, %s265_s24  }
  0x26   : > { %p922_p0 = scmp.lt.s32.totalorder %s679_s30, 3  ;;  %p923_p2 = scmp.ge.s32.totalorder %s679_s30, 1 }
  0x27   : > { %s828_s18 = scalar_lea.hbm %s911_s1, %s523_s17  ;;  %s286_s19 = scalar_lea.vmem [#allocation4], %s522_s16 }
  0x28   : > { %p819_p3 = pnand %p923_p2, %p922_p0  ;;  %s293_s21 = sshll.u32 %s286_s19, 4  ;;  %s294_s21 = int_to_ptr.vmem [resolvable:$true] %s293_s21 }
  0x29   : > { %s283_s20 = scalar_lea.sflag [#allocation5], %s769_s15  ;;  %s613_s22 = scalar_lea.hbm %s828_s18, 128 }
  0x2a   : > { %s924_s25 = scalar_select %p819_p3, 1, 0 }
  0x2b   : > { %p614_p9 = scmp.ne.s32.totalorder %s828_s18, %s613_s22  ;;  %s618_s26 = scalar_lea.hbm %s911_s1, 256 }
  0x2c   : > { %p619_p5 = scmp.lt.s32.totalorder %s828_s18, %s911_s1  ;;  %p620_p6 = scmp.lt.s32.totalorder %s618_s26, %s613_s22 }
  0x2d   : > { %p616_p10 = pnand %p614_p9, %p587_p12 }
  0x2e   : > { %p621_p11 = por %p620_p6, %p619_p5 }
  0x2f   : > { %p617_p4 = pneg %p616_p10 }
  0x31   : > { %p622_p13 = pnand %p621_p11, %p617_p4 }
  0x33   : > { %625 = shalt.err (!%p622_p13)
}
  0x34   : > { %s626_s16 = scalar_lea.vmem %s294_s21, 128  ;;  %s682_s15 = smov [#allocation4]  }
  0x35   : > { %p627_p1 = scmp.ne.s32.totalorder %s294_s21, %s626_s16  ;;  %s631_s11 = sshll.u32 %s682_s15, 4  ;;  %s632_s11 = int_to_ptr.vmem [resolvable:$false] %s631_s11 }
  0x36   : > { %s633_s12 = scalar_lea.vmem %s632_s11, 256  ;;  %p634_p9 = scmp.lt.s32.totalorder %s294_s21, %s632_s11 }
  0x37   : > { %p629_p0 = pnand %p627_p1, %p587_p12  ;;  %p635_p10 = scmp.lt.s32.totalorder %s633_s12, %s626_s16 }
  0x39   : > { %p630_p2 = pneg %p629_p0  ;;  %p636_p7 = por %p635_p10, %p634_p9 }
  0x3b   : > { %p637_p3 = pnand %p636_p7, %p630_p2 }
  0x3d   : > { %640 = shalt.err (!%p637_p3)
}
  0x3e   : > { %547 = dma.hbm_to_vmem [thread:$0]  (!%p784_p8), %s828_s18, 128, %s294_s21, %s283_s20  }
  0x3f   : > { %p925_p4 = scmp.ne.s32.totalorder %s924_s25, 0 }
  0x40   : > { %s304_s19 = sand.u32 (!%p925_p4), 1, %s671_s28   ;;  %p926_p12 = scmp.ne.s32.totalorder (!%p925_p4), %s920_s14, 0 }
  0x41   : > { %302 = sbr.rel (%p925_p4) target bundleno = 387 (0x183), region = 52  ;;  %s527_s22 = sshll.u32 (!%p925_p4), %s304_s19, 3 }
  0x42   : > { %s305_s30 = scalar_lea.sflag (!%p925_p4), [#allocation3], %s304_s19  ;;  %s308_s24 = scalar_lea.vmem (!%p925_p4), [#allocation2], %s527_s22 }
  0x46   : > { %658 = dma.done.wait (%p926_p12), %s305_s30, 128  }
  0x47   : > { %660 = vsyncadd (%p926_p12), %s305_s30, 4294967168  ;;  %s314_s26 = scalar_lea.sflag [#allocation5], %s304_s19  ;;  %s317_s17 = scalar_lea.vmem [#allocation4], %s527_s22 }
  0x48   : > { %662 = dma.done.wait (%p926_p12), %s314_s26, 128  }
  0x49   : > { %664 = vsyncadd (%p926_p12), %s314_s26, 4294967168  ;;  %vm363_vm0 = vcmask 261120   ;;  %v360_v0 = vld [vmem:[%s308_s24] sm:$0xff]  ;;  %v392_v1 = vld [vmem:[%s317_s17] sm:$0xff]  ;;  %p355_p7 = scmp.lt.s32.totalorder %s747_s9, 1  ;;  %vm423_vm1 = vcmask 253952  }
  0x4a   : > { %v364_v2 = vsel %vm363_vm0, %v360_v0, 0.0  ;;  %v395_v3 = vsel %vm363_vm0, %v392_v1, 0.0  ;;  %v422_v4 = vld [vmem:[%s912_s2] sm:$0x1] }
  0x4b   : > { %365 = vadd.xlane.f32.xlu0 %v364_v2  ;;  %s932_s9 = smov (!%p355_p7, %s747_s9), 1  ;;  %v426_v5 = vld [vmem:[%s913_s3] sm:$0x1] }
  0x4c   : > { %s536_s23 = smul.u32 24, %s932_s9  ;;  %v530_v23 = vld [vmem:[%s914_s4] ss:$0 sm:$0xff] }
  0x4d   : > { %v531_v25 = vld [vmem:[%s915_s5] ss:$0 sm:$0xff] }
  0x4e   : > { %s875_s16 = scalar_lea.vmem %s918_s8, %s536_s23  ;;  %v532_v28 = vld [vmem:[%s916_s6] ss:$0 sm:$0xff] }
  0x4f   : > { %396 = vadd.xlane.f32.xlu0 %v395_v3  ;;  %424 = vst.msk [vmem:[%s875_s16] sm:$0x1] %vm423_vm1, %v422_v4  ;;  %427 = vst.msk [vmem:[%s875_s16 + $0x9] sm:$0x1] %vm423_vm1, %v426_v5  ;;  %v533_v31 = vld [vmem:[%s917_s7] ss:$0 sm:$0xff] }
  0xd4   : > { %v366_v6 = vpop.xlane.xlu0 %365 }
  0xd5   : > { %v368_v7 = vmul.f32 0.03125, %v366_v6 }
  0xd7   : > { %v369_v8 = vsub.f32 %v360_v0, %v368_v7 }
  0xd8   : > { %v397_v9 = vpop.xlane.xlu0 %396 }
  0xd9   : > { %v398_v10 = vmul.f32 0.03125, %v397_v9  ;;  %v370_v11 = vmul.f32 %v369_v8, %v369_v8 }
  0xdb   : > { %v399_v12 = vsub.f32 %v392_v1, %v398_v10  ;;  %v371_v13 = vsel %vm363_vm0, %v370_v11, 0.0 }
  0xdc   : > { %372 = vadd.xlane.f32.xlu1 %v371_v13 }
  0xdd   : > { %v400_v14 = vmul.f32 %v399_v12, %v399_v12 }
  0xdf   : > { %v401_v15 = vsel %vm363_vm0, %v400_v14, 0.0 }
  0xe0   : > { %402 = vadd.xlane.f32.xlu1 %v401_v15 }
 0x165   : > { %v373_v16 = vpop.xlane.xlu1 %372 }
 0x166   : > { %v374_v17 = vmul.f32 0.03125, %v373_v16 }
 0x168   : > { %v375_v18 = vadd.f32 1e-05, %v374_v17 }
 0x169   : > { %v403_v19 = vpop.xlane.xlu1 %402 }
 0x16a   : > { %581 = vrsqrt.f32 %v375_v18  ;;  %v404_v20 = vmul.f32 0.03125, %v403_v19 }
 0x16c   : > { %v405_v21 = vadd.f32 1e-05, %v404_v20 }
 0x16e   : > { %583 = vrsqrt.f32 %v405_v21 }
 0x177   : > { %v582_v22 = vpop.eup %581 }
 0x178   : > { %v377_v24 = vmul.f32 %v582_v22, %v369_v8 }
 0x17a   : > { %v384_v26 = vmul.f32 %v530_v23, %v377_v24 }
 0x17b   : > { %v584_v27 = vpop.eup %583 }
 0x17c   : > { %v391_v29 = vadd.f32 %v531_v25, %v384_v26  ;;  %v407_v30 = vmul.f32 %v584_v27, %v399_v12 }
 0x17e   : > { %425 = vst.msk [vmem:[%s875_s16 + $0x1] sm:$0xff] %vm363_vm0, %v391_v29  ;;  %v414_v32 = vmul.f32 %v532_v28, %v407_v30 }
 0x180   : > { %v421_v33 = vadd.f32 %v533_v31, %v414_v32 }
 0x182   : > { %428 = vst.msk [vmem:[%s875_s16 + $0xa] sm:$0xff] %vm363_vm0, %v421_v33 }
 0x183 PF: > { %p21_p8 = scmp.ge.s32.totalorder %s750_s10, 4   ;;  %s927_s27 = smov %s671_s28 }
 0x184   : > { %s928_s28 = smov %s675_s29  ;;  %s929_s29 = smov %s760_s13 }
 0x185   : > { %s930_s30 = smov %s750_s10  ;;  %23 = sbr.rel (!%p21_p8) target bundleno = 5 (0x5), region = 105 }
 0x18a   :  { %450 = vsyncpa [#allocation3], 1 }
 0x18b   :  { %452 = vsyncpa [#allocation3 + $0x1], 1 }
 0x18c   :  { %453 = vsyncpa [#allocation5], 1 }
 0x18d   :  { %455 = vsyncpa [#allocation5 + $0x1], 1 }

</bundles_post_ra>
